<compile_context>
chip_gen: v7x
topology: tpu7x:2x2x1
jax: 0.10.0
libtpu: 0.0.40
codegen_flags: <defaults>
</compile_context>

<pallas_src>
import jax
import jax.numpy as jnp
from jax.experimental import pallas as pl
from jax.experimental.pallas import tpu as pltpu

LANE = 128
SUBLANE = 8
CHUNK_ROWS = 512                 # in-kernel compute chunk (256 KiB f32 temps)
BLOCK_BYTES = 4 * 1024 * 1024    # HBM->VMEM block budget per input per step


def _make_kernel(rows, tile_rows, chunk_rows, nchunks, nblocks):
    ragged = (nblocks * tile_rows) != rows
    whole_groups = (chunk_rows % SUBLANE) == 0
    groups = chunk_rows // SUBLANE if whole_groups else None

    def _accum(x_ref, y_ref, out_ref, start, nvalid=None):
        xs = x_ref[pl.ds(start, chunk_rows), :].astype(jnp.float32)
        ys = y_ref[pl.ds(start, chunk_rows), :].astype(jnp.float32)
        d = xs - ys
        dd = d * d
        if nvalid is not None:
            # mask rows past the end of the (ragged) last block
            rid = jax.lax.broadcasted_iota(jnp.int32, dd.shape, 0)
            dd = jnp.where(rid < nvalid, dd, 0.0)
        if whole_groups:
            # pure-VPU leading-axis sum onto the vreg-shaped resident accumulator
            out_ref[...] += dd.reshape(groups, SUBLANE, LANE).sum(axis=0)
        else:
            # tiny single-block case (rows not a multiple of 8)
            out_ref[0:1, :] += jnp.sum(dd, axis=0, keepdims=True)

    def kernel(x_ref, y_ref, out_ref):
        i = pl.program_id(0)

        @pl.when(i == 0)
        def _init():
            out_ref[...] = jnp.zeros_like(out_ref)

        if not ragged:
            @pl.loop(0, nchunks)
            def _(c):
                start = pl.multiple_of(c * chunk_rows, chunk_rows)
                _accum(x_ref, y_ref, out_ref, start)
        else:
            # interior blocks: mask-free fast path
            @pl.when(i < nblocks - 1)
            def _interior():
                @pl.loop(0, nchunks)
                def _(c):
                    start = pl.multiple_of(c * chunk_rows, chunk_rows)
                    _accum(x_ref, y_ref, out_ref, start)

            # last (ragged) block: per-chunk gating (full / masked / skip)
            @pl.when(i == nblocks - 1)
            def _last():
                block_row0 = i * tile_rows

                @pl.loop(0, nchunks)
                def _(c):
                    start = pl.multiple_of(c * chunk_rows, chunk_rows)
                    nvalid = rows - (block_row0 + start)

                    @pl.when(nvalid >= chunk_rows)
                    def _full():
                        _accum(x_ref, y_ref, out_ref, start)

                    @pl.when(jnp.logical_and(nvalid > 0, nvalid < chunk_rows))
                    def _partial():
                        _accum(x_ref, y_ref, out_ref, start, nvalid=nvalid)

    return kernel


def psnr_metric(x, y):
    """Equivalent of PSNRMetrics().forward(x, y): 10*log10(1/MSELoss(x, y))."""
    assert x.shape == y.shape
    n = x.size
    assert n > 0

    xf = x.reshape(-1)
    yf = y.reshape(-1)

    rows = n // LANE
    n_main = rows * LANE
    itemsize = jnp.dtype(x.dtype).itemsize

    # Non-128-aligned tail: cheap plain-JAX correction (no padded copies).
    if n_main != n:
        tail_sq = jnp.sum((xf[n_main:].astype(jnp.float32)
                           - yf[n_main:].astype(jnp.float32)) ** 2)
    else:
        tail_sq = None

    if rows == 0:
        sum_sq = tail_sq
    else:
        if n_main != n:
            # TODO(synk): this prefix slice is still an XLA copy for unaligned n;
            # a truly copy-free path would need a 1-D view + manual DMA.
            xm, ym = xf[:n_main], yf[:n_main]
        else:
            xm, ym = xf, yf
        x2 = xm.reshape(rows, LANE)
        y2 = ym.reshape(rows, LANE)

        # dtype-aware block sizing: constant ~4 MiB per input per grid step
        budget_rows = max(
            CHUNK_ROWS,
            (BLOCK_BYTES // (LANE * itemsize)) // CHUNK_ROWS * CHUNK_ROWS,
        )

        if rows < CHUNK_ROWS:
            tile_rows = rows
            chunk_rows = rows
            nchunks = 1
        else:
            tile_rows = min(budget_rows, (rows // CHUNK_ROWS) * CHUNK_ROWS)
            chunk_rows = CHUNK_ROWS
            nchunks = tile_rows // CHUNK_ROWS
        nblocks = pl.cdiv(rows, tile_rows)

        partials = pl.pallas_call(
            _make_kernel(rows, tile_rows, chunk_rows, nchunks, nblocks),
            out_shape=jax.ShapeDtypeStruct((SUBLANE, LANE), jnp.float32),
            grid=(nblocks,),
            in_specs=[
                pl.BlockSpec((tile_rows, LANE), lambda i: (i, 0)),
                pl.BlockSpec((tile_rows, LANE), lambda i: (i, 0)),
            ],
            out_specs=pl.BlockSpec((SUBLANE, LANE), lambda i: (0, 0)),
            compiler_params=pltpu.CompilerParams(
                dimension_semantics=("arbitrary",),
                vmem_limit_bytes=32 * 1024 * 1024,
            ),
            cost_estimate=pl.CostEstimate(
                flops=3 * n_main,
                transcendentals=0,
                bytes_accessed=2 * n_main * itemsize,
            ),
        )(x2, y2)

        sum_sq = jnp.sum(partials)
        if tail_sq is not None:
            sum_sq = sum_sq + tail_sq

    mse = sum_sq / jnp.float32(n)
    return 10.0 * jnp.log10(1.0 / mse)


if __name__ == "__main__":
    key = jax.random.PRNGKey(0)
    k0, k1, k2, k3 = jax.random.split(key, 4)

    # Primary demo: NCHW images in [0, 1] (PSNR peak = 1.0)
    x = jax.random.uniform(k0, (2, 4, 16, 16), dtype=jnp.float32)
    y = jax.random.uniform(k1, (2, 4, 16, 16), dtype=jnp.float32)
    result = psnr_metric(x, y)
    jax.block_until_ready(result)
    mse_ref = jnp.mean((x - y) ** 2)
    psnr_ref = 10.0 * jnp.log10(1.0 / mse_ref)
    assert jnp.allclose(result, psnr_ref, rtol=1e-5, atol=1e-4), (result, psnr_ref)

    # Secondary check: exercises multi-block grid, ragged last block
    # (masked + skipped chunks) and the non-128-aligned tail correction.
    x2 = jax.random.uniform(k2, (2, 3, 312, 317), dtype=jnp.float32)
    y2 = jax.random.uniform(k3, (2, 3, 312, 317), dtype=jnp.float32)
    r2 = psnr_metric(x2, y2)
    jax.block_until_ready(r2)
    mse2 = jnp.mean((x2 - y2) ** 2)
    ref2 = 10.0 * jnp.log10(1.0 / mse2)
    assert jnp.allclose(r2, ref2, rtol=1e-4, atol=1e-3), (r2, ref2)

    print("KERNEL_OK")
</pallas_src>

<mosaic_0001>
module attributes {stable_mosaic.version = 11 : i64} {
  func.func @kernel(%arg0: i32, %arg1: memref<16x128xf32, #tpu.memory_space<vmem>>, %arg2: memref<16x128xf32, #tpu.memory_space<vmem>>, %arg3: memref<8x128xf32, #tpu.memory_space<vmem>>) attributes {dimension_semantics = [#tpu.dimension_semantics<arbitrary>], iteration_bounds = array<i64: 1>, scalar_prefetch = 0 : i64, scratch_operands = 0 : i64, tpu.core_type = #tpu.core_type<tc>, window_params = [{transform_indices = @transform_0, window_bounds = array<i64: 16, 128>}, {transform_indices = @transform_1, window_bounds = array<i64: 16, 128>}, {pipeline_mode = #tpu.pipeline_mode<synchronous>, transform_indices = @transform_2, window_bounds = array<i64: 8, 128>}]} {
    %c0_i32 = arith.constant 0 : i32
    %0 = arith.cmpi eq, %arg0, %c0_i32 : i32
    %1 = arith.extui %0 : i1 to i32
    %c0_i32_0 = arith.constant 0 : i32
    %2 = arith.cmpi ne, %1, %c0_i32_0 : i32
    scf.if %2 {
      %cst_9 = arith.constant 0.000000e+00 : f32
      %18 = vector.broadcast %cst_9 : f32 to vector<8x128xf32>
      %c0_10 = arith.constant 0 : index
      %c0_11 = arith.constant 0 : index
      %19 = vector.load %arg3[%c0_10, %c0_11] : memref<8x128xf32, #tpu.memory_space<vmem>>, vector<8x128xf32>
      tpu.vector_store %arg3[%c0_10, %c0_11], %18 {strides = array<i32>} : memref<8x128xf32, #tpu.memory_space<vmem>>, vector<8x128xf32>,
    } else {
    }
    %c0_i32_1 = arith.constant 0 : i32
    %c1_i32 = arith.constant 1 : i32
    %3 = arith.muli %c0_i32_1, %c1_i32 : i32
    %c0_i32_2 = arith.constant 0 : i32
    %4 = arith.addi %c0_i32_2, %3 : i32
    %c16_i32 = arith.constant 16 : i32
    %5 = arith.muli %4, %c16_i32 : i32
    %6 = tpu.assume_multiple %5, 16 : i32
    %7 = arith.index_cast %6 : i32 to index
    %c0 = arith.constant 0 : index
    %8 = vector.load %arg1[%7, %c0] : memref<16x128xf32, #tpu.memory_space<vmem>>, vector<16x128xf32>
    %9 = arith.index_cast %6 : i32 to index
    %c0_3 = arith.constant 0 : index
    %10 = vector.load %arg2[%9, %c0_3] : memref<16x128xf32, #tpu.memory_space<vmem>>, vector<16x128xf32>
    %11 = arith.subf %8, %10 : vector<16x128xf32>
    %12 = arith.mulf %11, %11 : vector<16x128xf32>
    %c0_4 = arith.constant 0 : index
    %c0_5 = arith.constant 0 : index
    %13 = vector.load %arg3[%c0_4, %c0_5] : memref<8x128xf32, #tpu.memory_space<vmem>>, vector<8x128xf32>
    %14 = vector.shape_cast %12 : vector<16x128xf32> to vector<2x8x128xf32>
    %cst = arith.constant dense<0.000000e+00> : vector<8x128xf32>
    %15 = vector.multi_reduction <add>, %14, %cst [0] : vector<2x8x128xf32> to vector<8x128xf32>
    %16 = arith.addf %13, %15 : vector<8x128xf32>
    %c0_6 = arith.constant 0 : index
    %c0_7 = arith.constant 0 : index
    %17 = vector.load %arg3[%c0_6, %c0_7] : memref<8x128xf32, #tpu.memory_space<vmem>>, vector<8x128xf32>
    tpu.vector_store %arg3[%c0_6, %c0_7], %16 {strides = array<i32>} : memref<8x128xf32, #tpu.memory_space<vmem>>, vector<8x128xf32>,
    %c1_i32_8 = arith.constant 1 : i32
    return
  }
  func.func @transform_0(%arg0: i32) -> (i32, i32) {
    %c0_i32 = arith.constant 0 : i32
    %c0_i32_0 = arith.constant 0 : i32
    return %arg0, %c0_i32 : i32, i32
  }
  func.func @transform_1(%arg0: i32) -> (i32, i32) {
    %c0_i32 = arith.constant 0 : i32
    %c0_i32_0 = arith.constant 0 : i32
    return %arg0, %c0_i32 : i32, i32
  }
  func.func @transform_2(%arg0: i32) -> (i32, i32) {
    %c0_i32 = arith.constant 0 : i32
    %c0_i32_0 = arith.constant 0 : i32
    %c0_i32_1 = arith.constant 0 : i32
    return %c0_i32, %c0_i32_0 : i32, i32
  }
}

</mosaic_0001>

<bundles_post_ra>
// kernel: tpu_custom_call.1
= control target key start
LH: loop header
LB: loop body
LE: loop exit
PB: predicated region body
PF: predicated region fallthrough
CT: control target
= control target key end

     0   :  { %7 = vsyncpa [#allocation3], 0  ;;  %s207_s0 = inlined_call_operand.hbm [shape: f32[16,128], index: 0, kind: input, shape index: {}]   ;;  %s208_s1 = inlined_call_operand.hbm [shape: f32[16,128], index: 1, kind: input, shape index: {}]   ;;  %s209_s2 = inlined_call_operand.hbm [shape: f32[8,128], index: 2, kind: output, shape index: {}]  }
   0x1   :  { %8 = vsyncpa [#allocation6], 0 }
   0x2   :  { %9 = vsyncpa [#allocation4], 0  ;;  %s151_s9 = smov [#allocation2]   ;;  %s79_s13 = scalar_lea.hbm %s207_s0, 256 }
   0x3   :  { %s15_s10 = sshll.u32 %s151_s9, 4  ;;  %p80_p0 = scmp.ne.s32.totalorder %s207_s0, %s79_s13  ;;  %s16_s10 = int_to_ptr.vmem [resolvable:$true] %s15_s10 }
   0x4   :  { %p83_p1 = scmp.lt.u32.totalorder %s79_s13, %s207_s0 }
   0x6   :  { %p85_p2 = pnand %p83_p1, %p80_p0 }
   0x8   :  { %88 = shalt.err (!%p85_p2)
}
   0x9   :  { %s89_s18 = scalar_lea.vmem %s16_s10, 256  ;;  %p94_p4 = scmp.lt.s32.totalorder %s16_s10, %s16_s10 }
   0xa   :  { %p90_p3 = scmp.ne.s32.totalorder %s16_s10, %s89_s18  ;;  %p95_p5 = scmp.lt.s32.totalorder %s89_s18, %s89_s18 }
   0xc   :  { %p96_p6 = por %p95_p5, %p94_p4 }
   0xe   :  { %p97_p7 = pnand %p96_p6, %p90_p3 }
  0x10   :  { %100 = shalt.err (!%p97_p7)
}
  0x11   :  { %s152_s19 = smov 128   ;;  %s153_s20 = smov 8  }
  0x12   :  { %21 = dma.hbm_to_vmem [thread:$0]  %s207_s0, 256, %s16_s10, [#allocation3], %s152_s19, %s152_s19, %s153_s20  }
  0x13   :  { %s154_s23 = smov [#allocation5]   ;;  %s101_s27 = scalar_lea.hbm %s208_s1, 256 }
  0x14   :  { %s27_s24 = sshll.u32 %s154_s23, 4  ;;  %p102_p8 = scmp.ne.s32.totalorder %s208_s1, %s101_s27  ;;  %s28_s24 = int_to_ptr.vmem [resolvable:$true] %s27_s24 }
  0x15   :  { %p105_p9 = scmp.lt.u32.totalorder %s101_s27, %s208_s1 }
  0x17   :  { %p107_p10 = pnand %p105_p9, %p102_p8 }
  0x19   :  { %110 = shalt.err (!%p107_p10)
}
  0x1a   :  { %s111_s4 = scalar_lea.vmem %s28_s24, 256  ;;  %p116_p12 = scmp.lt.s32.totalorder %s28_s24, %s28_s24 }
  0x1b   :  { %p112_p11 = scmp.ne.s32.totalorder %s28_s24, %s111_s4  ;;  %p117_p13 = scmp.lt.s32.totalorder %s111_s4, %s111_s4 }
  0x1d   :  { %p118_p0 = por %p117_p13, %p116_p12 }
  0x1f   :  { %p119_p1 = pnand %p118_p0, %p112_p11 }
  0x21   :  { %122 = shalt.err (!%p119_p1)
}
  0x22   :  { %33 = dma.hbm_to_vmem [thread:$0]  %s208_s1, 256, %s28_s24, [#allocation6], %s152_s19, %s152_s19, %s153_s20  }
  0x23   :  { %145 = dma.done.wait [#allocation3], 256  }
  0x24   :  { %146 = vsyncadd [#allocation3], 4294967040 }
  0x25   :  { %147 = dma.done.wait [#allocation6], 256  }
  0x26   :  { %148 = vsyncadd [#allocation6], 4294967040  ;;  %v45_v0 = vld [vmem:[#allocation2] sm:$0xff]  ;;  %v46_v1 = vld [vmem:[#allocation2 + $0x8] sm:$0xff]  ;;  %s155_s6 = smov [#allocation7]  }
  0x27   :  { %v47_v2 = vld [vmem:[#allocation5] sm:$0xff]  ;;  %v48_v3 = vld [vmem:[#allocation5 + $0x8] sm:$0xff]  ;;  %s63_s7 = sshll.u32 %s155_s6, 4  ;;  %s64_s7 = int_to_ptr.vmem [resolvable:$true] %s63_s7 }
  0x28   :  { %v49_v4 = vsub.f32 %v45_v0, %v47_v2  ;;  %v50_v5 = vsub.f32 %v46_v1, %v48_v3  ;;  %s123_s8 = scalar_lea.vmem %s64_s7, 128  ;;  %p128_p3 = scmp.lt.s32.totalorder %s64_s7, %s64_s7 }
  0x29   :  { %p124_p2 = scmp.ne.s32.totalorder %s64_s7, %s123_s8  ;;  %p129_p4 = scmp.lt.s32.totalorder %s123_s8, %s123_s8 }
  0x2a   :  { %v51_v6 = vmul.f32 %v49_v4, %v49_v4  ;;  %v52_v7 = vmul.f32 %v50_v5, %v50_v5 }
  0x2b   :  { %p130_p5 = por %p129_p4, %p128_p3 }
  0x2c   :  { %v54_v8 = vadd.f32 %v52_v7, %v51_v6 }
  0x2d   :  { %p131_p6 = pnand %p130_p5, %p124_p2 }
  0x2e   :  { %56 = vst [vmem:[#allocation7] sm:$0xff] %v54_v8 }
  0x2f   :  { %134 = shalt.err (!%p131_p6)
}
  0x30   :  { %s135_s10 = scalar_lea.hbm %s209_s2, 128 }
  0x31   :  { %p136_p7 = scmp.ne.s32.totalorder %s209_s2, %s135_s10  ;;  %p139_p8 = scmp.lt.u32.totalorder %s135_s10, %s209_s2 }
  0x33   :  { %p141_p9 = pnand %p139_p8, %p136_p7 }
  0x35   :  { %144 = shalt.err (!%p141_p9)
}
  0x36   :  { %66 = dma.vmem_to_hbm [thread:$0]  %s64_s7, 128, %s209_s2, [#allocation4]  }
  0x37   :  { %149 = dma.done.wait [#allocation4], 128  }
  0x38   :  { %150 = vsyncadd [#allocation4], 4294967168 }
  0x39   :  { %70 = vsyncpa [#allocation3], 1 }
  0x3a   :  { %71 = vsyncpa [#allocation6], 1 }
  0x3b   :  { %72 = vsyncpa [#allocation4], 1 }

</bundles_post_ra>
